<compile_context>
chip_gen: v7x
topology: tpu7x:2x2x1
jax: 0.10.0
libtpu: 0.0.40
codegen_flags: <defaults>
</compile_context>

<pallas_src>
import functools
import math

import jax
import jax.numpy as jnp
from jax.experimental import pallas as pl
from jax.experimental.pallas import tpu as pltpu


# ----------------------------- helpers ------------------------------------ #

def _round_up(x: int, m: int) -> int:
    return ((x + m - 1) // m) * m


def _sublane(dtype) -> int:
    # second-minor tiling requirement: 8 for 4-byte, 16 for 2-byte, 32 for 1-byte
    return max(8, 32 // jnp.dtype(dtype).itemsize)


def _pick_m_tile(m: int, sub: int, max_tile: int = 512) -> int:
    """M tile (multiple of `sub`) that avoids large padding blow-ups."""
    tm = min(max_tile, _round_up(m, sub))
    while tm % (2 * sub) == 0:
        m_pad = _round_up(m, tm)
        if (m_pad - m) * 8 <= m_pad:   # waste <= 12.5% of padded rows
            break
        tm //= 2
    return tm


def _pick_lane_tile(d: int, max_tile: int = 512) -> int:
    """Lane-dim tile: 128-aligned, prefer 256 alignment (v6e/v7x MXU width)."""
    p128 = _round_up(d, 128)
    if p128 <= 128:
        return 128
    p256 = _round_up(d, 256)
    tile = p256 if (p256 - d) <= 128 else p128
    return min(max_tile, tile)


def _pad2d(a, rows: int, cols: int):
    r, c = a.shape
    if r == rows and c == cols:
        return a                      # skip the HBM copy when no padding needed
    return jnp.pad(a, ((0, rows - r), (0, cols - c)))


def _vmem_limit_bytes(tm, tk, tn, in_itemsize, out_itemsize, has_acc) -> int:
    per_step = 2 * (tm * tk * in_itemsize     # x (double-buffered)
                    + tk * tn * in_itemsize   # w
                    + tn * 4                  # bias (f32)
                    + tm * tn * out_itemsize) # out
    if has_acc:
        per_step += tm * tn * 4               # f32 accumulator scratch
    # Floor 32 MiB (cheap on all gens), cap 48 MiB so v7x (64 MiB/TC) is safe.
    return int(min(max(2 * per_step, 32 * 1024 * 1024), 48 * 1024 * 1024))


# ----------------------------- kernels ------------------------------------ #

def _linear_kernel_noacc(x_ref, w_ref, b_ref, o_ref):
    # x: (TM, K)  w: (K, TN)  b: (1, TN)  o: (TM, TN)
    acc = jnp.dot(x_ref[...], w_ref[...], preferred_element_type=jnp.float32)
    o_ref[...] = (acc + b_ref[...].astype(jnp.float32)).astype(o_ref.dtype)


def _linear_kernel_acc(x_ref, w_ref, b_ref, o_ref, acc_ref):
    # x: (TM, TK)  w: (TK, TN)  b: (1, TN)  o: (TM, TN)  acc: (TM, TN) f32
    k = pl.program_id(2)

    @pl.when(k == 0)
    def _():
        acc_ref[...] = jnp.zeros_like(acc_ref)

    acc_ref[...] += jnp.dot(x_ref[...], w_ref[...],
                            preferred_element_type=jnp.float32)

    @pl.when(k == pl.num_programs(2) - 1)
    def _():
        o_ref[...] = (acc_ref[...] + b_ref[...].astype(jnp.float32)
                      ).astype(o_ref.dtype)


# ----------------------------- wrapper ------------------------------------ #

@functools.partial(jax.jit, static_argnames=("use_pallas", "use_bf16"))
def linear_norm(x, weight, bias, *, use_pallas=True, use_bf16=False):
    """y = x @ weight.T + bias  (torch.nn.Linear semantics).

    x:      (..., in_dim)
    weight: (out_dim, in_dim)   -- torch Linear layout
    bias:   (out_dim,)
    """
    *lead, in_dim = x.shape
    out_dim = weight.shape[0]
    m = int(math.prod(lead)) if lead else 1
    out_dtype = x.dtype

    x2d = x.reshape(m, in_dim)

    if not use_pallas:
        out = x2d @ weight.T + bias
        return out.reshape(*lead, out_dim)

    compute_dtype = jnp.bfloat16 if use_bf16 else x.dtype
    sub = _sublane(compute_dtype)
    itemsize = jnp.dtype(compute_dtype).itemsize

    # One-time weight transpose to (in_dim, out_dim); fused with the pad below.
    wt = weight.T.astype(compute_dtype)
    xc = x2d.astype(compute_dtype)
    b2d = bias.reshape(1, out_dim).astype(jnp.float32)

    # ---- path selection --------------------------------------------------- #
    k_min = _round_up(in_dim, 128)
    n_min = _round_up(out_dim, 128)
    w_resident_ok = (k_min <= 1024 and n_min <= 1024
                     and k_min * n_min * itemsize <= 4 * 1024 * 1024)

    if w_resident_ok:
        # Whole W lives in VMEM (constant index_map -> DMA'd once); only x and
        # y stream.  Grid is 1-D over M tiles.
        k_pad, n_pad = k_min, n_min
        tk, tn = k_pad, n_pad
        tm = _pick_m_tile(m, sub)
        m_pad = _round_up(m, tm)
        # v7x megacore: give the 'parallel' axis >= 2 tiles when possible.
        if (m_pad // tm) < 2 and tm % (2 * sub) == 0:
            tm //= 2
            m_pad = _round_up(m, tm)

        x_p = _pad2d(xc, m_pad, k_pad)
        w_p = _pad2d(wt, k_pad, n_pad)
        b_p = _pad2d(b2d, 1, n_pad)

        out = pl.pallas_call(
            _linear_kernel_noacc,
            out_shape=jax.ShapeDtypeStruct((m_pad, n_pad), out_dtype),
            grid_spec=pltpu.PrefetchScalarGridSpec(
                num_scalar_prefetch=0,
                grid=(m_pad // tm,),
                in_specs=[
                    pl.BlockSpec((tm, k_pad), lambda i: (i, 0)),     # x tile
                    pl.BlockSpec((k_pad, n_pad), lambda i: (0, 0)),  # W resident
                    pl.BlockSpec((1, n_pad), lambda i: (0, 0)),      # bias
                ],
                out_specs=pl.BlockSpec((tm, n_pad), lambda i: (i, 0)),
            ),
            compiler_params=pltpu.CompilerParams(
                dimension_semantics=("parallel",),
                vmem_limit_bytes=_vmem_limit_bytes(
                    tm, tk, tn, itemsize, jnp.dtype(out_dtype).itemsize, False),
            ),
        )(x_p, w_p, b_p)

    else:
        # General tiled path: grid over (M, N[, K]) with K last ("arbitrary").
        tn = _pick_lane_tile(out_dim)
        tk = _pick_lane_tile(in_dim)
        n_pad = _round_up(out_dim, tn)
        k_pad = _round_up(in_dim, tk)
        tm = _pick_m_tile(m, sub)
        m_pad = _round_up(m, tm)
        if (m_pad // tm) * (n_pad // tn) < 2 and tm % (2 * sub) == 0:
            tm //= 2
            m_pad = _round_up(m, tm)

        x_p = _pad2d(xc, m_pad, k_pad)
        w_p = _pad2d(wt, k_pad, n_pad)
        b_p = _pad2d(b2d, 1, n_pad)

        single_k = (k_pad == tk)
        if single_k:
            grid = (m_pad // tm, n_pad // tn)
            kernel = _linear_kernel_noacc
            in_specs = [
                pl.BlockSpec((tm, tk), lambda i, j: (i, 0)),
                pl.BlockSpec((tk, tn), lambda i, j: (0, j)),
                pl.BlockSpec((1, tn), lambda i, j: (0, j)),
            ]
            out_specs = pl.BlockSpec((tm, tn), lambda i, j: (i, j))
            scratch = []
            dims = ("parallel", "parallel")
        else:
            grid = (m_pad // tm, n_pad // tn, k_pad // tk)
            kernel = _linear_kernel_acc
            in_specs = [
                pl.BlockSpec((tm, tk), lambda i, j, k: (i, k)),
                pl.BlockSpec((tk, tn), lambda i, j, k: (k, j)),
                pl.BlockSpec((1, tn), lambda i, j, k: (0, j)),
            ]
            out_specs = pl.BlockSpec((tm, tn), lambda i, j, k: (i, j))
            scratch = [pltpu.VMEM((tm, tn), jnp.float32)]
            dims = ("parallel", "parallel", "arbitrary")

        out = pl.pallas_call(
            kernel,
            out_shape=jax.ShapeDtypeStruct((m_pad, n_pad), out_dtype),
            grid_spec=pltpu.PrefetchScalarGridSpec(
                num_scalar_prefetch=0,
                grid=grid,
                in_specs=in_specs,
                out_specs=out_specs,
                scratch_shapes=scratch,
            ),
            compiler_params=pltpu.CompilerParams(
                dimension_semantics=dims,
                vmem_limit_bytes=_vmem_limit_bytes(
                    tm, tk, tn, itemsize, jnp.dtype(out_dtype).itemsize,
                    not single_k),
            ),
        )(x_p, w_p, b_p)

    out = out[:m, :out_dim]
    return out.reshape(*lead, out_dim)


# --------------------------- parameter init -------------------------------- #

def init_linear_norm_params(key, in_dim, out_dim, w_init_gain="linear"):
    """weight: xavier_uniform_ (gain=1 for 'linear'); bias: torch Linear default."""
    kw, kb = jax.random.split(key)
    gain = 1.0  # torch.nn.init.calculate_gain('linear') == 1.0
    bound_w = gain * math.sqrt(6.0 / (in_dim + out_dim))
    weight = jax.random.uniform(kw, (out_dim, in_dim), jnp.float32,
                                minval=-bound_w, maxval=bound_w)
    bound_b = 1.0 / math.sqrt(in_dim)
    bias = jax.random.uniform(kb, (out_dim,), jnp.float32,
                              minval=-bound_b, maxval=bound_b)
    return weight, bias


# ------------------------------- demo -------------------------------------- #

if __name__ == "__main__":
    key = jax.random.PRNGKey(0)
    k1, k2, k3, k4 = jax.random.split(key, 4)

    # 1) Typical small LinearNorm -> weight-resident / no-accumulator path.
    batch, seq, in_dim, out_dim = 2, 8, 32, 64
    x = jax.random.normal(k1, (batch, seq, in_dim), dtype=jnp.float32)
    weight, bias = init_linear_norm_params(k2, in_dim, out_dim)

    y = linear_norm(x, weight, bias, use_pallas=True)
    y = jax.block_until_ready(y)
    y_ref = x @ weight.T + bias
    assert y.shape == (batch, seq, out_dim)
    assert jnp.allclose(y, y_ref, atol=1e-5, rtol=1e-5)

    # 2) Large in_dim -> general tiled path with K reduction + f32 accumulator.
    in_dim2, out_dim2 = 1100, 64
    x2 = jax.random.normal(k3, (batch, seq, in_dim2), dtype=jnp.float32)
    weight2, bias2 = init_linear_norm_params(k4, in_dim2, out_dim2)

    y2 = linear_norm(x2, weight2, bias2, use_pallas=True)
    y2 = jax.block_until_ready(y2)
    y2_ref = x2 @ weight2.T + bias2
    assert y2.shape == (batch, seq, out_dim2)
    assert jnp.allclose(y2, y2_ref, atol=1e-4, rtol=1e-4)

    print("KERNEL_OK")
</pallas_src>

<mosaic_0001>
module attributes {stable_mosaic.version = 11 : i64} {
  func.func @_linear_kernel_noacc(%arg0: i32, %arg1: memref<8x128xf32, #tpu.memory_space<vmem>>, %arg2: memref<128x128xf32, #tpu.memory_space<vmem>>, %arg3: memref<1x128xf32, #tpu.memory_space<vmem>>, %arg4: memref<8x128xf32, #tpu.memory_space<vmem>>) attributes {dimension_semantics = [#tpu.dimension_semantics<parallel>], iteration_bounds = array<i64: 2>, scalar_prefetch = 0 : i64, scratch_operands = 0 : i64, tpu.core_type = #tpu.core_type<tc>, window_params = [{transform_indices = @transform_0, window_bounds = array<i64: 8, 128>}, {pipeline_mode = #tpu.pipeline_mode<synchronous>, transform_indices = @transform_1, window_bounds = array<i64: 128, 128>}, {pipeline_mode = #tpu.pipeline_mode<synchronous>, transform_indices = @transform_2, window_bounds = array<i64: 1, 128>}, {transform_indices = @transform_3, window_bounds = array<i64: 8, 128>}]} {
    %c0 = arith.constant 0 : index
    %c0_0 = arith.constant 0 : index
    %0 = vector.load %arg1[%c0, %c0_0] : memref<8x128xf32, #tpu.memory_space<vmem>>, vector<8x128xf32>
    %c0_1 = arith.constant 0 : index
    %c0_2 = arith.constant 0 : index
    %1 = vector.load %arg2[%c0_1, %c0_2] : memref<128x128xf32, #tpu.memory_space<vmem>>, vector<128x128xf32>
    %cst = arith.constant dense<0.000000e+00> : vector<8x128xf32>
    %2 = tpu.matmul %0, %1, %cst {dimension_numbers = #tpu.dot_dimension_numbers<[1], [0], [0], [1], [0, 0, 1, 1], [], []>} : vector<8x128xf32>, vector<128x128xf32>, vector<8x128xf32> -> vector<8x128xf32>
    %c0_3 = arith.constant 0 : index
    %c0_4 = arith.constant 0 : index
    %3 = vector.load %arg3[%c0_3, %c0_4] : memref<1x128xf32, #tpu.memory_space<vmem>>, vector<1x128xf32>
    %4 = vector.broadcast %3 : vector<1x128xf32> to vector<8x128xf32>
    %5 = arith.addf %2, %4 : vector<8x128xf32>
    %c0_5 = arith.constant 0 : index
    %c0_6 = arith.constant 0 : index
    %6 = vector.load %arg4[%c0_5, %c0_6] : memref<8x128xf32, #tpu.memory_space<vmem>>, vector<8x128xf32>
    tpu.vector_store %arg4[%c0_5, %c0_6], %5 {strides = array<i32>} : memref<8x128xf32, #tpu.memory_space<vmem>>, vector<8x128xf32>,
    return
  }
  func.func @transform_0(%arg0: i32) -> (i32, i32) {
    %c0_i32 = arith.constant 0 : i32
    %c0_i32_0 = arith.constant 0 : i32
    return %arg0, %c0_i32 : i32, i32
  }
  func.func @transform_1(%arg0: i32) -> (i32, i32) {
    %c0_i32 = arith.constant 0 : i32
    %c0_i32_0 = arith.constant 0 : i32
    %c0_i32_1 = arith.constant 0 : i32
    return %c0_i32, %c0_i32_0 : i32, i32
  }
  func.func @transform_2(%arg0: i32) -> (i32, i32) {
    %c0_i32 = arith.constant 0 : i32
    %c0_i32_0 = arith.constant 0 : i32
    %c0_i32_1 = arith.constant 0 : i32
    return %c0_i32, %c0_i32_0 : i32, i32
  }
  func.func @transform_3(%arg0: i32) -> (i32, i32) {
    %c0_i32 = arith.constant 0 : i32
    %c0_i32_0 = arith.constant 0 : i32
    return %arg0, %c0_i32 : i32, i32
  }
}

</mosaic_0001>

<bundles_post_ra>
// kernel: linear_norm.1
= control target key start
LH: loop header
LB: loop body
LE: loop exit
PB: predicated region body
PF: predicated region fallthrough
CT: control target
= control target key end

     0   :  { %s442_s12 = smov 0   ;;  %s514_s0 = inlined_call_operand.vmem [shape: f32[16,128], index: 0, kind: input, shape index: {}]   ;;  %s515_s1 = inlined_call_operand.vmem [shape: f32[128,128], index: 1, kind: input, shape index: {}]   ;;  %s516_s2 = inlined_call_operand.vmem [shape: f32[1,128], index: 2, kind: input, shape index: {}]   ;;  %s517_s3 = inlined_call_operand.vmem [shape: f32[16,128], index: 3, kind: output, shape index: {}]  }
   0x1 LB: > { %s314_s13 = sadd.s32 4294967295, %s417_s12   ;;  %p318_p0 = scmp.ge.s32.totalorder %s417_s12, 1  ;;  %s417_s12 = sphi %s442_s12, %s13_s12  }
   0x2   : > { %p136_p1 = scmp.lt.s32.totalorder %s417_s12, 3 }
   0x4   : > { %p137_p2 = pnand %p318_p0, %p136_p1 }
   0x5   : > { %v167_v0 = vld [vmem:[%s515_s1] sm:$0xff] (!%p137_p2)  ;;  %v168_v1 = vld [vmem:[%s515_s1 + $0x8] sm:$0xff] (!%p137_p2)  ;;  %v169_v2 = vld [vmem:[%s515_s1 + $0x10] sm:$0xff] (!%p137_p2)  ;;  %v419_v3 = vmov (!%p137_p2), 0.0|0.0   ;;  %vm420_vm0 = vmmov (!%p137_p2), 0   ;;  %v421_v6 = vmov (!%p137_p2), 0.0  }
   0x6   : > { %140 = sbr.rel (%p137_p2) target bundleno = 254 (0xfe), region = 32  ;;  %376 = vmatprep.subr.bf16.mxu0 (!%p137_p2), %v419_v3  ;;  %v377_v4 = vpack.c.bf16 (!%p137_p2), %v168_v1, %v167_v0  ;;  %v170_v5 = vld [vmem:[%s515_s1 + $0x18] sm:$0xff] (!%p137_p2)  ;;  %373 = vmatprep.mubr.msk.f32.mxu0 (!%p137_p2), %vm420_vm0, %v421_v6  ;;  %v171_v8 = vld [vmem:[%s515_s1 + $0x20] sm:$0xff] (!%p137_p2)  ;;  %v172_v9 = vld [vmem:[%s515_s1 + $0x28] sm:$0xff] (!%p137_p2)  ;;  %p158_p3 = scmp.lt.s32.totalorder (!%p137_p2), %s314_s13, 1 }
   0x7   : > { %v380_v7 = vpack.c.bf16 (!%p137_p2), %v170_v5, %v169_v2  ;;  %v383_v10 = vpack.c.bf16 (!%p137_p2), %v172_v9, %v171_v8  ;;  %v173_v11 = vld [vmem:[%s515_s1 + $0x30] sm:$0xff] (!%p137_p2)  ;;  %v174_v12 = vld [vmem:[%s515_s1 + $0x38] sm:$0xff] (!%p137_p2)  ;;  %v175_v14 = vld [vmem:[%s515_s1 + $0x40] sm:$0xff] (!%p137_p2) }
   0x8   : > { %378 = vmatpush3.bf16.msra.mxu0 (!%p137_p2), %v377_v4  ;;  %v386_v13 = vpack.c.bf16 (!%p137_p2), %v174_v12, %v173_v11  ;;  %v176_v15 = vld [vmem:[%s515_s1 + $0x48] sm:$0xff] (!%p137_p2)  ;;  %v177_v17 = vld [vmem:[%s515_s1 + $0x50] sm:$0xff] (!%p137_p2)  ;;  %v178_v18 = vld [vmem:[%s515_s1 + $0x58] sm:$0xff] (!%p137_p2) }
   0x9   : > { %379 = vmatprep.subr.bf16.mxu0 (!%p137_p2), %v419_v3  ;;  %v389_v16 = vpack.c.bf16 (!%p137_p2), %v176_v15, %v175_v14  ;;  %v392_v19 = vpack.c.bf16 (!%p137_p2), %v178_v18, %v177_v17  ;;  %v179_v20 = vld [vmem:[%s515_s1 + $0x60] sm:$0xff] (!%p137_p2)  ;;  %v180_v21 = vld [vmem:[%s515_s1 + $0x68] sm:$0xff] (!%p137_p2)  ;;  %v181_v23 = vld [vmem:[%s515_s1 + $0x70] sm:$0xff] (!%p137_p2) }
   0xa   : > { %v395_v22 = vpack.c.bf16 (!%p137_p2), %v180_v21, %v179_v20  ;;  %v182_v24 = vld [vmem:[%s515_s1 + $0x78] sm:$0xff] (!%p137_p2)  ;;  %v321_v27 = vld [vmem:[%s516_s2] ss:$0 sm:$0xff] (!%p137_p2) }
   0xb   : > { %v398_v25 = vpack.c.bf16 (!%p137_p2), %v182_v24, %v181_v23 }
   0xc   : > { %381 = vmatpush3.bf16.msra.mxu0 (!%p137_p2), %v380_v7 }
   0xd   : > { %382 = vmatprep.subr.bf16.mxu0 %v419_v3  ;;  %s519_s13 = smov (!%p158_p3, %s314_s13), 1 }
   0xe   : > { %s319_s21 = sshll.u32 %s519_s13, 3 }
   0xf   : > { %s161_s24 = scalar_lea.vmem %s514_s0, %s319_s21  ;;  %s165_s29 = scalar_lea.vmem %s517_s3, %s319_s21 }
  0x10   : > { %384 = vmatpush3.bf16.msra.mxu0 %v383_v10  ;;  %v166_v26 = vld [vmem:[%s161_s24] sm:$0xff] }
  0x11   : > { %385 = vmatprep.subr.bf16.mxu0 %v419_v3 }
  0x14   : > { %387 = vmatpush3.bf16.msra.mxu0 %v386_v13 }
  0x15   : > { %388 = vmatprep.subr.bf16.mxu0 %v419_v3 }
  0x18   : > { %390 = vmatpush3.bf16.msra.mxu0 %v389_v16 }
  0x19   : > { %391 = vmatprep.subr.bf16.mxu0 %v419_v3 }
  0x1c   : > { %393 = vmatpush3.bf16.msra.mxu0 %v392_v19 }
  0x1d   : > { %394 = vmatprep.subr.bf16.mxu0 %v419_v3 }
  0x20   : > { %396 = vmatpush3.bf16.msra.mxu0 %v395_v22 }
  0x21   : > { %397 = vmatprep.subr.bf16.mxu0 %v419_v3 }
  0x24   : > { %399 = vmatpush3.bf16.msra.mxu0 %v398_v25 }
  0x27   : > { %374 = vmatmul.mubr.f32.vlgmr.msra.gmra.mrb[0].mxu0 %v166_v26 }
  0xfa   : > { %v256_v28 = vpop.f32.mrb[0].mxu0 }
  0xfb   : > { %v257_v29 = vadd.f32 %v321_v27, %v256_v28  ;;  %v375_v30 = vpop.f32.mrb[1].mxu0 }
  0xfd   : > { %260 = vst [vmem:[%s165_s29] sm:$0xff] %v257_v29 }
  0xfe PF: > { %s13_s12 = sadd.s32 1, %s417_s12  }
  0xff   : > { %p10_p4 = scmp.ge.s32.totalorder %s13_s12, 4  }
 0x101   :  { %12 = sbr.rel (!%p10_p4) target bundleno = 1 (0x1), region = 62 }

</bundles_post_ra>
